<compile_context>
chip_gen: v5e
topology: v5e:2x2
jax: 0.10.0
libtpu: 0.0.40
codegen_flags: <defaults>
</compile_context>

<pallas_src>
import math
import functools

import jax
import jax.numpy as jnp
from jax.experimental import pallas as pl
from jax.experimental.pallas import tpu as pltpu


def _bert_embeddings_kernel(tq, hidden, eps,
                            ids_ref,        # SMEM (B, Sp) int32   (scalar prefetch)
                            tt_ref,         # VMEM (1, tq, 1) int32
                            pe_ref,         # VMEM (tq, H) f32
                            tok_tbl_ref,    # VMEM (2, H) f32
                            gamma_ref,      # VMEM (1, H) f32
                            beta_ref,       # VMEM (1, H) f32
                            word_hbm,       # ANY/HBM (V, H) f32
                            o_ref,          # VMEM (1, tq, H) f32
                            wbuf,           # scratch VMEM (2, tq, H) f32
                            gsem):          # scratch DMA semaphores (2,)
    b = pl.program_id(0)
    s = pl.program_id(1)
    n_s = pl.num_programs(1)
    slot = s % 2
    nslot = 1 - slot

    def start_gather(tile_idx, dst_slot):
        s0 = tile_idx * tq

        @pl.loop(0, tq)
        def _start(r):
            row = ids_ref[b, s0 + r]
            pltpu.make_async_copy(word_hbm.at[pl.ds(row, 1), :],
                                  wbuf.at[dst_slot, pl.ds(r, 1), :],
                                  gsem.at[dst_slot]).start()

    # Prime the gather pipeline on the first seq tile of every batch row.
    @pl.when(s == 0)
    def _prime():
        start_gather(s, slot)

    # Prefetch the next seq tile's word rows while this tile is processed.
    @pl.when(s + 1 < n_s)
    def _prefetch():
        start_gather(s + 1, nslot)

    # --- work that does not depend on the gathered word rows ----------------
    tt = tt_ref[0]                                                  # (tq, 1) int32
    tt_emb = jnp.where(tt == 0, tok_tbl_ref[0:1, :], tok_tbl_ref[1:2, :])
    base = pe_ref[...] + tt_emb                                     # (tq, H) f32

    # --- wait for this tile's gather -----------------------------------------
    @pl.loop(0, tq)
    def _wait(r):
        # the wait only needs the destination shape + semaphore; all copies are
        # the same size, so the source index used here is irrelevant.
        pltpu.make_async_copy(word_hbm.at[pl.ds(0, 1), :],
                              wbuf.at[slot, pl.ds(r, 1), :],
                              gsem.at[slot]).wait()

    emb = wbuf[slot].astype(jnp.float32) + base                     # (tq, H)

    # --- LayerNorm (torch semantics: unbiased std, divide by std+eps) --------
    mean = jnp.mean(emb, axis=-1, keepdims=True)
    xc = emb - mean
    var = jnp.sum(xc * xc, axis=-1, keepdims=True) / (hidden - 1)
    y = gamma_ref[...] * xc / (jnp.sqrt(var) + eps) + beta_ref[...]

    # dropout: identity (eval mode)
    o_ref[0] = y.astype(o_ref.dtype)


def bert_embeddings(input_ids, token_type_ids, word_table, pe_table,
                    tok_type_table, gamma, beta, *, eps=1e-6):
    """input_ids, token_type_ids: (B, S) int; word_table: (V, H);
    pe_table: (max_len, H); tok_type_table: (2, H); gamma/beta: (H,)."""
    B, S = input_ids.shape
    V, H = word_table.shape

    # seq tile: big enough to amortize per-step overhead, sublane aligned (x8).
    if S >= 256:
        tq = 256
    else:
        tq = ((S + 7) // 8) * 8
    Sp = ((S + tq - 1) // tq) * tq
    pad = Sp - S

    ids_p = jnp.pad(input_ids.astype(jnp.int32), ((0, 0), (0, pad)))
    tt_p = jnp.pad(token_type_ids.astype(jnp.int32), ((0, 0), (0, pad)))[..., None]
    pe_s = pe_table[:min(Sp, pe_table.shape[0])].astype(jnp.float32)  # (≤Sp, H)
    if pe_s.shape[0] < Sp:
        pe_s = jnp.pad(pe_s, ((0, Sp - pe_s.shape[0]), (0, 0)))
    gamma2d = gamma.reshape(1, H).astype(jnp.float32)
    beta2d = beta.reshape(1, H).astype(jnp.float32)

    kernel = functools.partial(_bert_embeddings_kernel, tq, H, eps)

    out = pl.pallas_call(
        kernel,
        out_shape=jax.ShapeDtypeStruct((B, Sp, H), jnp.float32),
        grid_spec=pltpu.PrefetchScalarGridSpec(
            num_scalar_prefetch=1,
            grid=(B, Sp // tq),
            in_specs=[
                pl.BlockSpec((1, tq, 1), lambda b, s, ids: (b, s, 0)),   # token-type ids
                pl.BlockSpec((tq, H), lambda b, s, ids: (s, 0)),          # positional rows
                pl.BlockSpec((2, H), lambda b, s, ids: (0, 0)),           # token-type table
                pl.BlockSpec((1, H), lambda b, s, ids: (0, 0)),           # gamma
                pl.BlockSpec((1, H), lambda b, s, ids: (0, 0)),           # beta
                pl.BlockSpec(memory_space=pl.ANY),                        # vocab table (HBM)
            ],
            out_specs=pl.BlockSpec((1, tq, H), lambda b, s, ids: (b, s, 0)),
            scratch_shapes=[
                pltpu.VMEM((2, tq, H), jnp.float32),       # double-buffered gather
                pltpu.SemaphoreType.DMA((2,)),
            ],
        ),
        compiler_params=pltpu.CompilerParams(
            dimension_semantics=("parallel", "arbitrary")),
    )(ids_p, tt_p, pe_s, tok_type_table.astype(jnp.float32),
      gamma2d, beta2d, word_table.astype(jnp.float32))

    return out[:, :S, :]


if __name__ == "__main__":
    batch, seq, hidden, vocab, max_len = 2, 16, 128, 512, 512

    key = jax.random.PRNGKey(0)
    k_ids, k_word, k_tok, k_g, k_b = jax.random.split(key, 5)

    input_ids = jax.random.randint(k_ids, (batch, seq), 1, vocab, dtype=jnp.int32)
    token_type_ids = jnp.concatenate(
        [jnp.zeros((batch, seq // 2), jnp.int32),
         jnp.ones((batch, seq - seq // 2), jnp.int32)], axis=1)

    word_table = jax.random.normal(k_word, (vocab, hidden), jnp.float32) * 0.02
    word_table = word_table.at[0].set(0.0)          # padding_idx=0 row
    tok_type_table = jax.random.normal(k_tok, (2, hidden), jnp.float32) * 0.02
    gamma = 1.0 + 0.1 * jax.random.normal(k_g, (hidden,), jnp.float32)
    beta = 0.1 * jax.random.normal(k_b, (hidden,), jnp.float32)

    # sinusoidal positional-encoding table (as in PositionalEncoding_for_BERT)
    position = jnp.arange(max_len, dtype=jnp.float32)[:, None]
    div_term = jnp.exp(jnp.arange(0, hidden, 2, dtype=jnp.float32)
                       * -(math.log(10000.0) / hidden))
    pe_table = jnp.zeros((max_len, hidden), jnp.float32)
    pe_table = pe_table.at[:, 0::2].set(jnp.sin(position * div_term))
    pe_table = pe_table.at[:, 1::2].set(jnp.cos(position * div_term))

    eps = 1e-6
    out = bert_embeddings(input_ids, token_type_ids, word_table, pe_table,
                          tok_type_table, gamma, beta, eps=eps)
    out = jax.block_until_ready(out)

    # plain-JAX reference of the same math (eval mode: dropout = identity)
    emb = (word_table[input_ids]
           + pe_table[:seq][None, :, :]
           + tok_type_table[token_type_ids])
    mean = emb.mean(-1, keepdims=True)
    xc = emb - mean
    std = jnp.sqrt(jnp.sum(xc * xc, -1, keepdims=True) / (hidden - 1))
    ref = gamma * xc / (std + eps) + beta

    assert out.shape == (batch, seq, hidden)
    assert jnp.allclose(out, ref, atol=1e-4, rtol=1e-4), \
        float(jnp.max(jnp.abs(out - ref)))

    print("KERNEL_OK")
</pallas_src>

<mosaic_0001>
module attributes {stable_mosaic.version = 11 : i64} {
  func.func @_bert_embeddings_kernel(%arg0: i32, %arg1: i32, %arg2: memref<2x16xi32, #tpu.memory_space<smem>>, %arg3: memref<1x16x1xi32, #tpu.memory_space<vmem>>, %arg4: memref<16x128xf32, #tpu.memory_space<vmem>>, %arg5: memref<2x128xf32, #tpu.memory_space<vmem>>, %arg6: memref<1x128xf32, #tpu.memory_space<vmem>>, %arg7: memref<1x128xf32, #tpu.memory_space<vmem>>, %arg8: memref<512x128xf32, #tpu.memory_space<any>>, %arg9: memref<1x16x128xf32, #tpu.memory_space<vmem>>, %arg10: memref<2x16x128xf32, #tpu.memory_space<vmem>>, %arg11: memref<2x!tpu.dma_semaphore, #tpu.memory_space<semaphore_mem>>) attributes {dimension_semantics = [#tpu.dimension_semantics<parallel>, #tpu.dimension_semantics<arbitrary>], iteration_bounds = array<i64: 2, 1>, scalar_prefetch = 1 : i64, scratch_operands = 2 : i64, tpu.core_type = #tpu.core_type<tc>, window_params = [{transform_indices = @transform_0, window_bounds = array<i64: 1, 16, 1>}, {transform_indices = @transform_1, window_bounds = array<i64: 16, 128>}, {pipeline_mode = #tpu.pipeline_mode<synchronous>, transform_indices = @transform_2, window_bounds = array<i64: 2, 128>}, {pipeline_mode = #tpu.pipeline_mode<synchronous>, transform_indices = @transform_3, window_bounds = array<i64: 1, 128>}, {pipeline_mode = #tpu.pipeline_mode<synchronous>, transform_indices = @transform_4, window_bounds = array<i64: 1, 128>}, {}, {transform_indices = @transform_6, window_bounds = array<i64: 1, 16, 128>}]} {
    %c2_i32 = arith.constant 2 : i32
    %c0_i32 = arith.constant 0 : i32
    %0 = arith.cmpi eq, %c2_i32, %c0_i32 : i32
    %c1_i32 = arith.constant 1 : i32
    %1 = arith.select %0, %c1_i32, %c2_i32 : i32
    %2 = arith.remsi %arg1, %1 : i32
    %c0_i32_0 = arith.constant 0 : i32
    %3 = arith.cmpi ne, %2, %c0_i32_0 : i32
    %c0_i32_1 = arith.constant 0 : i32
    %4 = arith.cmpi slt, %2, %c0_i32_1 : i32
    %c0_i32_2 = arith.constant 0 : i32
    %5 = arith.cmpi slt, %1, %c0_i32_2 : i32
    %6 = arith.xori %4, %5 : i1
    %7 = arith.andi %6, %3 : i1
    %8 = arith.addi %2, %1 : i32
    %9 = arith.select %7, %8, %2 : i32
    %c1_i32_3 = arith.constant 1 : i32
    %10 = arith.subi %c1_i32_3, %9 : i32
    %c0_i32_4 = arith.constant 0 : i32
    %11 = arith.cmpi eq, %arg1, %c0_i32_4 : i32
    %12 = arith.extui %11 : i1 to i32
    %c0_i32_5 = arith.constant 0 : i32
    %13 = arith.cmpi ne, %12, %c0_i32_5 : i32
    scf.if %13 {
      %c16_i32_33 = arith.constant 16 : i32
      %63 = arith.muli %arg1, %c16_i32_33 : i32
      %c0_i32_34 = arith.constant 0 : i32
      %c16_i32_35 = arith.constant 16 : i32
      %64 = arith.addi %c0_i32_34, %c16_i32_35 : i32
      %c1_i32_36 = arith.constant 1 : i32
      scf.for %arg12 = %c0_i32_34 to %64 step %c1_i32_36  : i32 {
        %c1_i32_38 = arith.constant 1 : i32
        %65 = arith.muli %arg12, %c1_i32_38 : i32
        %c0_i32_39 = arith.constant 0 : i32
        %66 = arith.addi %c0_i32_39, %65 : i32
        %67 = arith.addi %63, %66 : i32
        %68 = arith.index_cast %arg0 : i32 to index
        %69 = arith.index_cast %67 : i32 to index
        %70 = memref.load %arg2[%68, %69] : memref<2x16xi32, #tpu.memory_space<smem>>
        %c0_i32_40 = arith.constant 0 : i32
        %71 = tpu.memref_slice %arg8[%70, %c0_i32_40] : memref<512x128xf32, #tpu.memory_space<any>> -> memref<1x128xf32, #tpu.memory_space<any>>
        %c0_i32_41 = arith.constant 0 : i32
        %72 = tpu.memref_slice %arg10[%9, %66, %c0_i32_41] : memref<2x16x128xf32, #tpu.memory_space<vmem>> -> memref<1x1x128xf32, #tpu.memory_space<vmem>>
        %73 = tpu.memref_squeeze %72 : memref<1x1x128xf32, #tpu.memory_space<vmem>> -> memref<1x128xf32, #tpu.memory_space<vmem>>
        %74 = tpu.memref_slice %arg11[%9] : memref<2x!tpu.dma_semaphore, #tpu.memory_space<semaphore_mem>> -> memref<1x!tpu.dma_semaphore, #tpu.memory_space<semaphore_mem>>
        %75 = tpu.memref_squeeze %74 : memref<1x!tpu.dma_semaphore, #tpu.memory_space<semaphore_mem>> -> memref<!tpu.dma_semaphore, #tpu.memory_space<semaphore_mem>>
        tpu.enqueue_dma source(%71 : memref<1x128xf32, #tpu.memory_space<any>>) target(%73 : memref<1x128xf32, #tpu.memory_space<vmem>>) target_semaphore(%75 : memref<!tpu.dma_semaphore, #tpu.memory_space<semaphore_mem>>)
      }
      %c16_i32_37 = arith.constant 16 : i32
    } else {
    }
    %c1_i32_6 = arith.constant 1 : i32
    %14 = arith.addi %arg1, %c1_i32_6 : i32
    %c1_i32_7 = arith.constant 1 : i32
    %15 = arith.cmpi slt, %14, %c1_i32_7 : i32
    %16 = arith.extui %15 : i1 to i32
    %c0_i32_8 = arith.constant 0 : i32
    %17 = arith.cmpi ne, %16, %c0_i32_8 : i32
    scf.if %17 {
      %c1_i32_33 = arith.constant 1 : i32
      %63 = arith.addi %arg1, %c1_i32_33 : i32
      %c16_i32_34 = arith.constant 16 : i32
      %64 = arith.muli %63, %c16_i32_34 : i32
      %c0_i32_35 = arith.constant 0 : i32
      %c16_i32_36 = arith.constant 16 : i32
      %65 = arith.addi %c0_i32_35, %c16_i32_36 : i32
      %c1_i32_37 = arith.constant 1 : i32
      scf.for %arg12 = %c0_i32_35 to %65 step %c1_i32_37  : i32 {
        %c1_i32_39 = arith.constant 1 : i32
        %66 = arith.muli %arg12, %c1_i32_39 : i32
        %c0_i32_40 = arith.constant 0 : i32
        %67 = arith.addi %c0_i32_40, %66 : i32
        %68 = arith.addi %64, %67 : i32
        %69 = arith.index_cast %arg0 : i32 to index
        %70 = arith.index_cast %68 : i32 to index
        %71 = memref.load %arg2[%69, %70] : memref<2x16xi32, #tpu.memory_space<smem>>
        %c0_i32_41 = arith.constant 0 : i32
        %72 = tpu.memref_slice %arg8[%71, %c0_i32_41] : memref<512x128xf32, #tpu.memory_space<any>> -> memref<1x128xf32, #tpu.memory_space<any>>
        %c0_i32_42 = arith.constant 0 : i32
        %73 = tpu.memref_slice %arg10[%10, %67, %c0_i32_42] : memref<2x16x128xf32, #tpu.memory_space<vmem>> -> memref<1x1x128xf32, #tpu.memory_space<vmem>>
        %74 = tpu.memref_squeeze %73 : memref<1x1x128xf32, #tpu.memory_space<vmem>> -> memref<1x128xf32, #tpu.memory_space<vmem>>
        %75 = tpu.memref_slice %arg11[%10] : memref<2x!tpu.dma_semaphore, #tpu.memory_space<semaphore_mem>> -> memref<1x!tpu.dma_semaphore, #tpu.memory_space<semaphore_mem>>
        %76 = tpu.memref_squeeze %75 : memref<1x!tpu.dma_semaphore, #tpu.memory_space<semaphore_mem>> -> memref<!tpu.dma_semaphore, #tpu.memory_space<semaphore_mem>>
        tpu.enqueue_dma source(%72 : memref<1x128xf32, #tpu.memory_space<any>>) target(%74 : memref<1x128xf32, #tpu.memory_space<vmem>>) target_semaphore(%76 : memref<!tpu.dma_semaphore, #tpu.memory_space<semaphore_mem>>)
      }
      %c16_i32_38 = arith.constant 16 : i32
    } else {
    }
    %c0 = arith.constant 0 : index
    %c0_9 = arith.constant 0 : index
    %c0_10 = arith.constant 0 : index
    %18 = vector.load %arg3[%c0, %c0_9, %c0_10] : memref<1x16x1xi32, #tpu.memory_space<vmem>>, vector<1x16x1xi32>
    %19 = vector.shape_cast %18 : vector<1x16x1xi32> to vector<16x1xi32>
    %c0_i32_11 = arith.constant 0 : i32
    %20 = vector.broadcast %c0_i32_11 : i32 to vector<16x1xi32>
    %21 = arith.cmpi eq, %19, %20 : vector<16x1xi32>
    %c0_12 = arith.constant 0 : index
    %c0_13 = arith.constant 0 : index
    %22 = vector.load %arg5[%c0_12, %c0_13] : memref<2x128xf32, #tpu.memory_space<vmem>>, vector<1x128xf32>
    %c1 = arith.constant 1 : index
    %c0_14 = arith.constant 0 : index
    %23 = vector.load %arg5[%c1, %c0_14] : memref<2x128xf32, #tpu.memory_space<vmem>>, vector<1x128xf32>
    %24 = vector.shape_cast %21 : vector<16x1xi1> to vector<16x1xi1>
    %25 = vector.broadcast %24 : vector<16x1xi1> to vector<16x128xi1>
    %26 = vector.shape_cast %22 : vector<1x128xf32> to vector<1x128xf32>
    %27 = vector.broadcast %26 : vector<1x128xf32> to vector<16x128xf32>
    %28 = vector.shape_cast %23 : vector<1x128xf32> to vector<1x128xf32>
    %29 = vector.broadcast %28 : vector<1x128xf32> to vector<16x128xf32>
    %30 = arith.select %25, %27, %29 : vector<16x128xi1>, vector<16x128xf32>
    %c0_15 = arith.constant 0 : index
    %c0_16 = arith.constant 0 : index
    %31 = vector.load %arg4[%c0_15, %c0_16] : memref<16x128xf32, #tpu.memory_space<vmem>>, vector<16x128xf32>
    %32 = arith.addf %31, %30 : vector<16x128xf32>
    %c0_i32_17 = arith.constant 0 : i32
    %c16_i32 = arith.constant 16 : i32
    %33 = arith.addi %c0_i32_17, %c16_i32 : i32
    %c1_i32_18 = arith.constant 1 : i32
    scf.for %arg12 = %c0_i32_17 to %33 step %c1_i32_18  : i32 {
      %c1_i32_33 = arith.constant 1 : i32
      %63 = arith.muli %arg12, %c1_i32_33 : i32
      %c0_i32_34 = arith.constant 0 : i32
      %64 = arith.addi %c0_i32_34, %63 : i32
      %c0_i32_35 = arith.constant 0 : i32
      %c0_i32_36 = arith.constant 0 : i32
      %65 = tpu.memref_slice %arg8[%c0_i32_35, %c0_i32_36] : memref<512x128xf32, #tpu.memory_space<any>> -> memref<1x128xf32, #tpu.memory_space<any>>
      %c0_i32_37 = arith.constant 0 : i32
      %66 = tpu.memref_slice %arg10[%9, %64, %c0_i32_37] : memref<2x16x128xf32, #tpu.memory_space<vmem>> -> memref<1x1x128xf32, #tpu.memory_space<vmem>>
      %67 = tpu.memref_squeeze %66 : memref<1x1x128xf32, #tpu.memory_space<vmem>> -> memref<1x128xf32, #tpu.memory_space<vmem>>
      %68 = tpu.memref_slice %arg11[%9] : memref<2x!tpu.dma_semaphore, #tpu.memory_space<semaphore_mem>> -> memref<1x!tpu.dma_semaphore, #tpu.memory_space<semaphore_mem>>
      %69 = tpu.memref_squeeze %68 : memref<1x!tpu.dma_semaphore, #tpu.memory_space<semaphore_mem>> -> memref<!tpu.dma_semaphore, #tpu.memory_space<semaphore_mem>>
      tpu.wait_dma2 semaphore(%69 : memref<!tpu.dma_semaphore, #tpu.memory_space<semaphore_mem>>) src(%65 : memref<1x128xf32, #tpu.memory_space<any>>) dst(%67 : memref<1x128xf32, #tpu.memory_space<vmem>>)
    }
    %c16_i32_19 = arith.constant 16 : i32
    %34 = arith.index_cast %9 : i32 to index
    %c0_20 = arith.constant 0 : index
    %c0_21 = arith.constant 0 : index
    %35 = vector.load %arg10[%34, %c0_20, %c0_21] : memref<2x16x128xf32, #tpu.memory_space<vmem>>, vector<1x16x128xf32>
    %36 = vector.shape_cast %35 : vector<1x16x128xf32> to vector<16x128xf32>
    %37 = arith.addf %36, %32 : vector<16x128xf32>
    %cst = arith.constant dense<0.000000e+00> : vector<16xf32>
    %38 = vector.multi_reduction <add>, %37, %cst [1] : vector<16x128xf32> to vector<16xf32>
    %39 = vector.shape_cast %38 : vector<16xf32> to vector<16x1xf32>
    %cst_22 = arith.constant 1.280000e+02 : f32
    %40 = vector.broadcast %cst_22 : f32 to vector<16x1xf32>
    %41 = arith.divf %39, %40 : vector<16x1xf32>
    %42 = vector.broadcast %41 : vector<16x1xf32> to vector<16x128xf32>
    %43 = arith.subf %37, %42 : vector<16x128xf32>
    %44 = arith.mulf %43, %43 : vector<16x128xf32>
    %cst_23 = arith.constant dense<0.000000e+00> : vector<16xf32>
    %45 = vector.multi_reduction <add>, %44, %cst_23 [1] : vector<16x128xf32> to vector<16xf32>
    %46 = vector.shape_cast %45 : vector<16xf32> to vector<16x1xf32>
    %cst_24 = arith.constant 1.270000e+02 : f32
    %47 = vector.broadcast %cst_24 : f32 to vector<16x1xf32>
    %48 = arith.divf %46, %47 : vector<16x1xf32>
    %c0_25 = arith.constant 0 : index
    %c0_26 = arith.constant 0 : index
    %49 = vector.load %arg6[%c0_25, %c0_26] : memref<1x128xf32, #tpu.memory_space<vmem>>, vector<1x128xf32>
    %50 = vector.broadcast %49 : vector<1x128xf32> to vector<16x128xf32>
    %51 = arith.mulf %50, %43 : vector<16x128xf32>
    %52 = math.sqrt %48 : vector<16x1xf32>
    %cst_27 = arith.constant 9.99999997E-7 : f32
    %53 = vector.broadcast %cst_27 : f32 to vector<16x1xf32>
    %54 = arith.addf %52, %53 : vector<16x1xf32>
    %55 = vector.broadcast %54 : vector<16x1xf32> to vector<16x128xf32>
    %56 = arith.divf %51, %55 : vector<16x128xf32>
    %c0_28 = arith.constant 0 : index
    %c0_29 = arith.constant 0 : index
    %57 = vector.load %arg7[%c0_28, %c0_29] : memref<1x128xf32, #tpu.memory_space<vmem>>, vector<1x128xf32>
    %58 = vector.broadcast %57 : vector<1x128xf32> to vector<16x128xf32>
    %59 = arith.addf %56, %58 : vector<16x128xf32>
    %c0_30 = arith.constant 0 : index
    %c0_31 = arith.constant 0 : index
    %c0_32 = arith.constant 0 : index
    %60 = vector.load %arg9[%c0_30, %c0_31, %c0_32] : memref<1x16x128xf32, #tpu.memory_space<vmem>>, vector<1x16x128xf32>
    %61 = vector.shape_cast %60 : vector<1x16x128xf32> to vector<16x128xf32>
    %62 = vector.shape_cast %59 : vector<16x128xf32> to vector<1x16x128xf32>
    tpu.vector_store %arg9[%c0_30, %c0_31, %c0_32], %62 {strides = array<i32>} : memref<1x16x128xf32, #tpu.memory_space<vmem>>, vector<1x16x128xf32>,
    return
  }
  func.func @transform_0(%arg0: i32, %arg1: i32, %arg2: memref<2x16xi32, #tpu.memory_space<smem>>) -> (i32, i32, i32) {
    %c0_i32 = arith.constant 0 : i32
    %c0_i32_0 = arith.constant 0 : i32
    return %arg0, %arg1, %c0_i32 : i32, i32, i32
  }
  func.func @transform_1(%arg0: i32, %arg1: i32, %arg2: memref<2x16xi32, #tpu.memory_space<smem>>) -> (i32, i32) {
    %c0_i32 = arith.constant 0 : i32
    %c0_i32_0 = arith.constant 0 : i32
    return %arg1, %c0_i32 : i32, i32
  }
  func.func @transform_2(%arg0: i32, %arg1: i32, %arg2: memref<2x16xi32, #tpu.memory_space<smem>>) -> (i32, i32) {
    %c0_i32 = arith.constant 0 : i32
    %c0_i32_0 = arith.constant 0 : i32
    %c0_i32_1 = arith.constant 0 : i32
    return %c0_i32, %c0_i32_0 : i32, i32
  }
  func.func @transform_3(%arg0: i32, %arg1: i32, %arg2: memref<2x16xi32, #tpu.memory_space<smem>>) -> (i32, i32) {
    %c0_i32 = arith.constant 0 : i32
    %c0_i32_0 = arith.constant 0 : i32
    %c0_i32_1 = arith.constant 0 : i32
    return %c0_i32, %c0_i32_0 : i32, i32
  }
  func.func @transform_4(%arg0: i32, %arg1: i32, %arg2: memref<2x16xi32, #tpu.memory_space<smem>>) -> (i32, i32) {
    %c0_i32 = arith.constant 0 : i32
    %c0_i32_0 = arith.constant 0 : i32
    %c0_i32_1 = arith.constant 0 : i32
    return %c0_i32, %c0_i32_0 : i32, i32
  }
  func.func @transform_6(%arg0: i32, %arg1: i32, %arg2: memref<2x16xi32, #tpu.memory_space<smem>>) -> (i32, i32, i32) {
    %c0_i32 = arith.constant 0 : i32
    %c0_i32_0 = arith.constant 0 : i32
    return %arg0, %arg1, %c0_i32 : i32, i32, i32
  }
}

</mosaic_0001>

<bundles_post_ra>
// kernel: tpu_custom_call.1
= control target key start
LH: loop header
LB: loop body
LE: loop exit
PB: predicated region body
PF: predicated region fallthrough
CT: control target
= control target key end

     0   :  { %s922_s27 = smov [#allocation5]   ;;  %s1131_s0 = inlined_call_operand.vmem [shape: s32[2,16], index: 0, kind: input, shape index: {}]   ;;  %s1132_s1 = inlined_call_operand.vmem [shape: s32[2,16,1], index: 1, kind: input, shape index: {}]   ;;  %s1133_s2 = inlined_call_operand.vmem [shape: f32[16,128], index: 2, kind: input, shape index: {}]   ;;  %s1134_s3 = inlined_call_operand.vmem [shape: f32[2,128], index: 3, kind: input, shape index: {}]   ;;  %s1135_s4 = inlined_call_operand.vmem [shape: f32[1,128], index: 4, kind: input, shape index: {}]   ;;  %s1136_s5 = inlined_call_operand.vmem [shape: f32[1,128], index: 5, kind: input, shape index: {}]   ;;  %s1137_s6 = inlined_call_operand.hbm [shape: f32[512,128], index: 6, kind: input, shape index: {}]   ;;  %s1138_s7 = inlined_call_operand.hbm [shape: f32[2,16,128], index: 7, kind: output, shape index: {}]  }
   0x1   :  { %1143 = sst [smem:[#allocation21_spill]] %s1132_s1  ;;  %s13_s26 = sshll.u32 %s1131_s0, 4  ;;  %s14_s26 = int_to_ptr.vmem [resolvable:$true] %s13_s26 }
   0x2   :  { %16 = dma.vmem_to_smem %s14_s26, 32, %s922_s27, [#allocation4] }
   0x3   :  { %882 = dma.done.wait [#allocation4], 32 }
   0x4   :  { %883 = vsyncadd [#allocation4], 4294967264 }
   0x5   :  { %19 = sfence }
   0x6   :  { %20 = vsyncpa [#allocation7], 0 }
   0x7   :  { %22 = vsyncpa [#allocation7 + $0x1], 0  ;;  %s972_s28 = smov 0   ;;  %s974_s29 = smov 0  }
   0x8   :  { %s976_s30 = smov 0   ;;  %s978_s8 = smov 0  }
   0x9   :  { %s980_s9 = smov 0   ;;  %s982_s10 = smov 0  }
   0xa LB: > { %1144 = sst [smem:[#allocation17_spill]] %s900_s30  ;;  %s669_s0 = sadd.s32 4294967295, %s912_s10   ;;  %s912_s10 = sphi %s982_s10, %s28_s10   ;;  %s908_s9 = sphi %s980_s9, %s1155_s9   ;;  %s904_s8 = sphi %s978_s8, %s1154_s8   ;;  %s900_s30 = sphi %s976_s30, %s1153_s30   ;;  %s896_s29 = sphi %s974_s29, %s1157_s29   ;;  %s892_s28 = sphi %s972_s28, %s1156_s28  }
   0xb   : > { %1145 = sst [smem:[#allocation18_spill]] %s908_s9  ;;  %s670_s11 = sadd.s32 4294967294, %s912_s10  }
   0xc   : > { %s40_s12 = sadd.s32 1, %s908_s9  ;;  %s166_s13 = sadd.s32 1, %s900_s30 }
   0xd   : > { %p42_p0 = scmp.ge.s32.totalorder %s40_s12, 2  ;;  %p176_p1 = scmp.ne.s32.totalorder %s900_s30, %s896_s29 }
   0xe   : > { %p177_p2 = scmp.eq.s32.totalorder %s669_s0, 1  ;;  %p182_p3 = scmp.ne.s32.totalorder %s896_s29, %s892_s28 }
   0xf   : > { %s1159_s12 = smov (%p42_p0, %s40_s12), 0  ;;  %p183_p5 = scmp.eq.s32.totalorder %s670_s11, 1 }
  0x10   : > { %1146 = sst [smem:[#allocation19_spill]] %s1159_s12  ;;  %p1012_p4 = por %p177_p2, %p176_p1 }
  0x11   : > { %s161_s15 = ssub.s32 %s908_s9, %s1159_s12  ;;  %p674_p6 = scmp.ge.s32.totalorder %s912_s10, 1 }
  0x12   : > { %p164_p7 = scmp.eq.s32.totalorder %s161_s15, 0  ;;  %p1019_p8 = por %p183_p5, %p182_p3 }
  0x13   : > { %p232_p9 = scmp.lt.s32.totalorder %s912_s10, 3 }
  0x14   : > { %s1025_s17 = scalar_select %p164_p7, %s900_s30, %s166_s13  }
  0x15   : > { %p233_p10 = pnand %p674_p6, %p232_p9 }
  0x16   : > { %1149 = sst [smem:[#allocation20_spill]] %s1025_s17  ;;  %s1139_s18 = sand.u32 (!%p233_p10), 1, %s896_s29  }
  0x17   : > { %236 = sbr.rel (%p233_p10) target bundleno = 497 (0x1f1), region = 40  ;;  %p270_p11 = scmp.lt.s32.totalorder (!%p233_p10), %s904_s8, 1 }
  0x18   : > { %s675_s19 = sshll.u32 (!%p233_p10), %s1139_s18, 4  ;;  %s1150_s1 = sld [smem:[#allocation21_spill]] (!%p233_p10) }
  0x19   : > { %s1037_s25 = scalar_lea.vmem (!%p233_p10), [#allocation6], %s675_s19  ;;  %s1039_s26 = smov (!%p233_p10), 0  }
  0x1c   : > { %s271_s20 = scalar_select %p270_p11, %s904_s8, 1 }
  0x1e   : > { %s688_s21 = sshll.u32 %s271_s20, 4 }
  0x1f   : > { %s1035_s24 = scalar_lea.vmem %s1150_s1, %s688_s21 }
  0x20 LB: >> { %s311_s27 = sshra.s32 %s916_s26, 7  ;;  %s316_s0 = sand.u32 127, %s916_s26  ;;  %s916_s26 = sphi %s1039_s26, %s309_s26  }
  0x21   : >> { %s313_s11 = sadd.s32 %s904_s8, %s311_s27  ;;  %s322_s21 = scalar_lea.vmem [#allocation2], %s916_s26 }
  0x22   : >> { %s678_s13 = sshll.u32 %s313_s11, 7  ;;  %s333_s19 = sshll.u32 %s322_s21, 4  ;;  %s334_s19 = int_to_ptr.vmem [resolvable:$true] %s333_s19 }
  0x23   : >> { %s317_s15 = sadd.s32 %s678_s13, %s316_s0  ;;  %s802_s27 = scalar_lea.hbm %s1137_s6, 512 }
  0x24   : >> { %s318_s20 = sld [smem:[#allocation5 + %s317_s15]] }
  0x2a   : >> { %s319_s18 = scalar_lea.hbm %s1137_s6, %s318_s20 }
  0x2b   : >> { %s331_s1 = sshll.u32 %s319_s18, 4  ;;  %s332_s1 = int_to_ptr.hbm [resolvable:$true] %s331_s1 }
  0x2c   : >> { %s798_s12 = sshra.s32 %s332_s1, 4  ;;  %s799_s12 = int_to_ptr.hbm [resolvable:$true] %s798_s12 }
  0x2d   : >> { %s800_s9 = scalar_lea.hbm %s799_s12, 1  ;;  %p803_p13 = scmp.lt.s32.totalorder %s799_s12, %s1137_s6 }
  0x2e   : >> { %p801_p12 = scmp.ne.s32.totalorder %s799_s12, %s800_s9  ;;  %p804_p0 = scmp.lt.s32.totalorder %s802_s27, %s800_s9 }
  0x30   : >> { %p805_p1 = por %p804_p0, %p803_p13 }
  0x32   : >> { %p806_p2 = pnand %p805_p1, %p801_p12 }
  0x34   : >> { %809 = shalt.err (!%p806_p2)  }
  0x35   : >> { %s810_s13 = sshra.s32 %s334_s19, 4  ;;  %s923_s15 = smov [#allocation2]   ;;  %s811_s13 = int_to_ptr.vmem [resolvable:$true] %s810_s13 }
  0x36   : >> { %s812_s18 = scalar_lea.vmem %s811_s13, 1  ;;  %s814_s20 = scalar_lea.vmem %s923_s15, 32 }
  0x37   : >> { %p813_p3 = scmp.ne.s32.totalorder %s811_s13, %s812_s18  ;;  %p815_p5 = scmp.lt.s32.totalorder %s811_s13, [#allocation2] }
  0x38   : >> { %p816_p6 = scmp.lt.s32.totalorder %s814_s20, %s812_s18 }
  0x3a   : >> { %p817_p7 = por %p816_p6, %p815_p5 }
  0x3c   : >> { %p818_p9 = pnand %p817_p7, %p813_p3 }
  0x3e   : >> { %821 = shalt.err (!%p818_p9)  }
  0x3f   : >> { %336 = dma.hbm_to_vmem [thread:$0]  %s332_s1, 16, %s334_s19, [#allocation3] }
  0x40   : >> { %s309_s26 = sadd.s32 1, %s916_s26  }
  0x41   : >> { %p306_p10 = scmp.ge.s32.totalorder %s309_s26, 16  }
  0x42   : > { %v376_v0 = vld [vmem:[%s1035_s24] sm:$0xff] (%p306_p10)  ;;  %v924_v1 = vmov (%p306_p10), 0   ;;  %v377_v3 = vld [vmem:[%s1035_s24 + $0x8] sm:$0xff] (%p306_p10)  ;;  %s918_s19 = smov (%p306_p10), 0  }
  0x43   : > { %308 = sbr.rel (!%p306_p10) target bundleno = 32 (0x20), region = 124  ;;  %769 = vset.pattern.permute.xlu0 (%p306_p10), %v924_v1  ;;  %vm378_vm0 = vcmp.eq.s32.totalorder (%p306_p10), %v376_v0, 0  ;;  %vm379_vm1 = vcmp.eq.s32.totalorder (%p306_p10), %v377_v3, 0  ;;  %v770_v5 = vld [vmem:[%s1134_s3] ss:$0 sm:$0xff] (%p306_p10)  ;;  %v397_v11 = vld [vmem:[%s1133_s2 + $0x8] sm:$0xff] (%p306_p10) }
  0x44   : > { %v382_v2 = vsel (%p306_p10), %vm378_vm0, 1, %v924_v1  ;;  %v383_v4 = vsel (%p306_p10), %vm379_vm1, 1, %v924_v1  ;;  %v771_v6 = vld [vmem:[%s1134_s3 + $0x1] ss:$0 sm:$0xff] (%p306_p10) }
  0x45   : > { %385 = vperm.xlu0 (%p306_p10), %769, %v382_v2   ;;  %v396_v7 = vld [vmem:[%s1133_s2] sm:$0xff] (%p306_p10) }
  0x4d   : > { %388 = vperm.xlu0 %769, %v383_v4  }
  0xb7   : > { %v386_v8 = vpop.permute.xlu0 %385 }
  0xb8   : > { %vm390_vm2 = vcmp.eq.s32.totalorder %v386_v8, 1 }
  0xb9   : > { %v394_v9 = vsel %vm390_vm2, %v770_v5, %v771_v6 }
  0xba   : > { %v398_v10 = vadd.f32 %v396_v7, %v394_v9 }
  0xbf   : > { %v389_v12 = vpop.permute.xlu0 %388 }
  0xc0   : > { %vm391_vm3 = vcmp.eq.s32.totalorder %v389_v12, 1 }
  0xc1   : > { %v395_v13 = vsel %vm391_vm3, %v770_v5, %v771_v6 }
  0xc2   : > { %v399_v14 = vadd.f32 %v397_v11, %v395_v13 }
  0xc3 LB: >> { %884 = dma.done.wait [#allocation3], 16  ;;  %s920_s19 = sphi %s918_s19, %s405_s19  }
  0xc4   : >> { %885 = vsyncadd [#allocation3], 4294967280  ;;  %s405_s19 = sadd.s32 1, %s920_s19  }
  0xc5   : >> { %p402_p11 = scmp.ge.s32.totalorder %s405_s19, 16  }
  0xc6   : > { %v412_v15 = vld [vmem:[#allocation2] sm:$0xff] (%p402_p11)  ;;  %v413_v17 = vld [vmem:[#allocation2 + $0x8] sm:$0xff] (%p402_p11)  ;;  %v925_v19 = vmov (%p402_p11), 128.0   ;;  %v926_v34 = vmov (%p402_p11), 127.0   ;;  %s691_s0 = sshll.u32 (%p402_p11), %s904_s8, 4  ;;  %s531_s8 = sshll.u32 (%p402_p11), %s1037_s25, 4  ;;  %s532_s8 = int_to_ptr.vmem [resolvable:$true] %s531_s8 }
  0xc7   : > { %404 = sbr.rel (!%p402_p11) target bundleno = 195 (0xc3), region = 146  ;;  %v414_v16 = vadd.f32 (%p402_p11), %v412_v15, %v398_v10  ;;  %v415_v18 = vadd.f32 (%p402_p11), %v413_v17, %v399_v14  ;;  %774 = vrcp.f32 (%p402_p11), %v925_v19  ;;  %v772_v7 = vld [vmem:[%s1135_s4] ss:$0 sm:$0xff] (%p402_p11)  ;;  %s530_s15 = scalar_lea.hbm (%p402_p11), %s1138_s7, %s691_s0 }
  0xc8   : > { %776 = vrcp.f32 (%p402_p11), %v926_v34  ;;  %s533_s20 = sshll.u32 (%p402_p11), %s530_s15, 4  ;;  %s1151_s30 = sand.u32 (%p402_p11), 1, %s896_s29   ;;  %s534_s20 = int_to_ptr.hbm [resolvable:$true] %s533_s20 }
  0xc9   : > { %416 = vadd.xlane.f32.xlu0 (%p402_p11), %v414_v16  ;;  %s517_s1 = scalar_lea.sflag (%p402_p11), [#allocation7], %s1151_s30  ;;  %s836_s9 = sshra.s32 (%p402_p11), %s534_s20, 4  ;;  %s837_s9 = int_to_ptr.hbm [resolvable:$true] %s836_s9 }
  0xca   : > { %s838_s12 = scalar_lea.hbm (%p402_p11), %s837_s9, 16  ;;  %s842_s24 = scalar_lea.hbm (%p402_p11), %s1138_s7, 32 }
  0xcb   : > { %p839_p12 = scmp.ne.s32.totalorder (%p402_p11), %s837_s9, %s838_s12  ;;  %p843_p1 = scmp.lt.s32.totalorder (%p402_p11), %s837_s9, %s1138_s7 }
  0xcc   : > { %p844_p2 = scmp.lt.s32.totalorder %s842_s24, %s838_s12 }
  0xcd   : > { %v775_v20 = vpop.eup %774  ;;  %p840_p13 = pnand %p839_p12, %p1012_p4 }
  0xce   : > { %v421_v21 = vmul.f32 128.0, %v775_v20  ;;  %vm425_vm4 = vweird.f32 %v775_v20  ;;  %v777_v35 = vpop.eup %776  ;;  %p845_p3 = por %p844_p2, %p843_p1 }
  0xcf   : > { %v438_v36 = vmul.f32 127.0, %v777_v35  ;;  %vm442_vm5 = vweird.f32 %v777_v35  ;;  %p841_p0 = pneg %p840_p13 }
  0xd0   : > { %v422_v22 = vsub.f32 1.0, %v421_v21 }
  0xd1   : > { %418 = vadd.xlane.f32.xlu0 %v415_v18  ;;  %v439_v37 = vsub.f32 1.0, %v438_v36  ;;  %p846_p5 = pnand %p845_p3, %p841_p0 }
  0xd2   : > { %v423_v23 = vmul.f32 %v775_v20, %v422_v22 }
  0xd3   : > { %v440_v38 = vmul.f32 %v777_v35, %v439_v37 }
  0xd4   : > { %v424_v24 = vadd.f32 %v775_v20, %v423_v23 }
  0xd5   : > { %v441_v39 = vadd.f32 %v777_v35, %v440_v38 }
  0xd6   : > { %v426_v25 = vsel %vm425_vm4, %v775_v20, %v424_v24 }
  0xd7   : > { %v443_v40 = vsel %vm442_vm5, %v777_v35, %v441_v39 }
 0x13c   : > { %v417_v26 = vpop.xlane.xlu0 %416 }
 0x13d   : > { %v427_v27 = vmul.f32 %v426_v25, %v417_v26 }
 0x13f   : > { %v1074_v28 = vsub.f32 %v414_v16, %v427_v27  ;;  %v773_v16 = vld [vmem:[%s1136_s5] ss:$0 sm:$0xff] }
 0x141   : > { %v431_v29 = vmul.f32 %v1074_v28, %v1074_v28  ;;  %v450_v13 = vmul.f32 %v772_v7, %v1074_v28 }
 0x143   : > { %433 = vadd.xlane.f32.xlu1 %v431_v29 }
 0x144   : > { %v419_v30 = vpop.xlane.xlu0 %418 }
 0x145   : > { %v428_v31 = vmul.f32 %v426_v25, %v419_v30 }
 0x147   : > { %v1078_v32 = vsub.f32 %v415_v18, %v428_v31 }
 0x149   : > { %v432_v33 = vmul.f32 %v1078_v32, %v1078_v32  ;;  %v451_v26 = vmul.f32 %v772_v7, %v1078_v32 }
 0x14b   : > { %435 = vadd.xlane.f32.xlu1 %v432_v33 }
 0x1b6   : > { %v434_v41 = vpop.xlane.xlu1 %433 }
 0x1b7   : > { %v444_v42 = vmul.f32 %v443_v40, %v434_v41 }
 0x1b9   : > { %778 = vrsqrt.f32 %v444_v42  ;;  %vm459_vm6 = vcmp.eq.f32.partialorder %v444_v42, inf  ;;  %v462_v55 = vand.u32 2147483648, %v444_v42  ;;  %vm461_vm7 = vcmp.eq.f32.partialorder %v444_v42, 0.0 }
 0x1be   : > { %v436_v43 = vpop.xlane.xlu1 %435 }
 0x1bf   : > { %v779_v44 = vpop.eup %778  ;;  %v445_v45 = vmul.f32 %v443_v40, %v436_v43 }
 0x1c0   : > { %v453_v46 = vmul.f32 %v779_v44, %v444_v42 }
 0x1c1   : > { %780 = vrsqrt.f32 %v445_v45  ;;  %vm471_vm8 = vcmp.eq.f32.partialorder %v445_v45, inf  ;;  %v474_v63 = vand.u32 2147483648, %v445_v45  ;;  %vm473_vm9 = vcmp.eq.f32.partialorder %v445_v45, 0.0 }
 0x1c2   : > { %v454_v47 = vmul.f32 %v779_v44, %v453_v46 }
 0x1c4   : > { %v455_v48 = vmul.f32 0.5, %v454_v47 }
 0x1c6   : > { %v456_v49 = vsub.f32 1.5, %v455_v48 }
 0x1c7   : > { %v781_v50 = vpop.eup %780 }
 0x1c8   : > { %v457_v51 = vmul.f32 %v779_v44, %v456_v49  ;;  %v465_v52 = vmul.f32 %v781_v50, %v445_v45 }
 0x1ca   : > { %v458_v53 = vmul.f32 %v457_v51, %v444_v42  ;;  %v466_v54 = vmul.f32 %v781_v50, %v465_v52 }
 0x1cc   : > { %v460_v56 = vsel %vm459_vm6, %v444_v42, %v458_v53  ;;  %v467_v57 = vmul.f32 0.5, %v466_v54 }
 0x1cd   : > { %v463_v58 = vsel %vm461_vm7, %v462_v55, %v460_v56 }
 0x1ce   : > { %v476_v59 = vadd.f32 1e-06, %v463_v58  ;;  %v468_v60 = vsub.f32 1.5, %v467_v57 }
 0x1d0   : > { %782 = vrcp.f32 %v476_v59  ;;  %v469_v61 = vmul.f32 %v781_v50, %v468_v60  ;;  %v489_v6 = vand.u32 2147483648, %v476_v59  ;;  %v487_v9 = vand.u32 2147483647, %v476_v59 }
 0x1d1   : > { %vm483_vm11 = vweird.f32 %v476_v59 }
 0x1d2   : > { %v470_v62 = vmul.f32 %v469_v61, %v445_v45  ;;  %v490_v12 = vor.u32 1.1754944e-38, %v489_v6  ;;  %vm488_vm13 = vcmp.eq.f32.partialorder %v487_v9, 8.507059e+37 }
 0x1d4   : > { %v472_v0 = vsel %vm471_vm8, %v445_v45, %v470_v62 }
 0x1d5   : > { %v475_v1 = vsel %vm473_vm9, %v474_v63, %v472_v0 }
 0x1d6   : > { %v783_v2 = vpop.eup %782  ;;  %v477_v3 = vadd.f32 1e-06, %v475_v1 }
 0x1d7   : > { %v479_v4 = vmul.f32 %v783_v2, %v476_v59  ;;  %vm484_vm10 = vweird.f32 %v783_v2 }
 0x1d8   : > { %784 = vrcp.f32 %v477_v3  ;;  %vm485_vm12 = vmor %vm483_vm11, %vm484_vm10  ;;  %v504_v20 = vand.u32 2147483648, %v477_v3  ;;  %v502_v22 = vand.u32 2147483647, %v477_v3  ;;  %vm498_vm15 = vweird.f32 %v477_v3 }
 0x1d9   : > { %v480_v5 = vsub.f32 1.0, %v479_v4 }
 0x1da   : > { %v505_v25 = vor.u32 1.1754944e-38, %v504_v20  ;;  %vm503_vm1 = vcmp.eq.f32.partialorder %v502_v22, 8.507059e+37 }
 0x1db   : > { %v481_v8 = vmul.f32 %v783_v2, %v480_v5 }
 0x1dd   : > { %v482_v10 = vadd.f32 %v783_v2, %v481_v8 }
 0x1de   : > { %v785_v11 = vpop.eup %784 }
 0x1df   : > { %v486_v14 = vsel %vm485_vm12, %v783_v2, %v482_v10  ;;  %v494_v15 = vmul.f32 %v785_v11, %v477_v3  ;;  %vm499_vm14 = vweird.f32 %v785_v11 }
 0x1e0   : > { %v491_v17 = vsel %vm488_vm13, %v490_v12, %v486_v14  ;;  %vm500_vm0 = vmor %vm498_vm15, %vm499_vm14 }
 0x1e1   : > { %v492_v18 = vmul.f32 %v491_v17, %v450_v13  ;;  %v495_v19 = vsub.f32 1.0, %v494_v15 }
 0x1e3   : > { %v496_v21 = vmul.f32 %v785_v11, %v495_v19  ;;  %v512_v23 = vadd.f32 %v773_v16, %v492_v18 }
 0x1e5   : > { %v497_v24 = vadd.f32 %v785_v11, %v496_v21  ;;  %514 = vst [vmem:[%s1037_s25] sm:$0xff] %v512_v23 }
 0x1e7   : > { %v501_v27 = vsel %vm500_vm0, %v785_v11, %v497_v24 }
 0x1e8   : > { %v506_v28 = vsel %vm503_vm1, %v505_v25, %v501_v27 }
 0x1e9   : > { %v507_v29 = vmul.f32 %v506_v28, %v451_v26 }
 0x1eb   : > { %v513_v30 = vadd.f32 %v773_v16, %v507_v29 }
 0x1ed   : > { %515 = vst [vmem:[%s1037_s25 + $0x8] sm:$0xff] %v513_v30 }
 0x1ee   : > { %849 = shalt.err (!%p846_p5)
}
 0x1ef   : > { %s927_s25 = smov 128   ;;  %s928_s22 = smov 8  }
 0x1f0   : > { %692 = dma.vmem_to_hbm [thread:$0]  (%p1012_p4), %s532_s8, 256, %s534_s20, %s517_s1, %s927_s25, %s927_s25, %s928_s22  }
 0x1f1 PF: > { %p698_p6 = scmp.ge.s32.totalorder %s912_s10, 2  ;;  %s548_s23 = sand.u32 1, %s892_s28  }
 0x1f2   : > { %s549_s27 = scalar_lea.sflag [#allocation7], %s548_s23 }
 0x1f3   : > { %p695_p7 = pnand %p698_p6, %p1019_p8 }
 0x1f5   : > { %p696_p9 = pneg %p695_p7 }
 0x1f7   : > { %887 = dma.done.wait (%p696_p9), %s549_s27, 256  }
 0x1f8   : > { %889 = vsyncadd (%p696_p9), %s549_s27, 4294967040  ;;  %s28_s10 = sadd.s32 1, %s912_s10   ;;  %s1152_s11 = sld [smem:[#allocation17_spill]] }
 0x1f9   : > { %p25_p10 = scmp.ge.s32.totalorder %s28_s10, 4   ;;  %s1153_s30 = sld [smem:[#allocation20_spill]] }
 0x1fa   : > { %s1154_s8 = sld [smem:[#allocation18_spill]]  ;;  %s1156_s28 = smov %s896_s29 }
 0x1fb   : > { %s1155_s9 = sld [smem:[#allocation19_spill]]  ;;  %27 = sbr.rel (!%p25_p10) target bundleno = 10 (0xa), region = 157 }
 0x1fe   : > { %s1157_s29 = smov %s1152_s11 }
 0x200   :  { %555 = vsyncpa [#allocation7], 1 }
 0x201   :  { %557 = vsyncpa [#allocation7 + $0x1], 1 }
 0x202   :  { %558 = vsyncmov [#allocation3] }
 0x205   :  { %s559_s14 = vpop.sfrf %558 }
 0x206   :  { %p686_p4 = scmp.ne.s32.totalorder %s559_s14, 0 }
 0x208   :  { %563 = shalt.err (%p686_p4)  }
 0x209   :  { %565 = vsyncmov [#allocation3 + $0x1] }
 0x20c   :  { %s566_s16 = vpop.sfrf %565 }
 0x20d   :  { %p687_p8 = scmp.ne.s32.totalorder %s566_s16, 0 }
 0x20f   :  { %570 = shalt.err (%p687_p8)  }

</bundles_post_ra>
